<compile_context>
chip_gen: v7x
topology: tpu7x:2x2x1
jax: 0.10.0
libtpu: 0.0.40
codegen_flags: <defaults>
</compile_context>

<pallas_src>
import functools
import math

import numpy as np
import jax
import jax.numpy as jnp
from jax import lax
from jax.experimental import pallas as pl
from jax.experimental.pallas import tpu as pltpu

# ------------------------- model dimensions (scaled) -------------------------
CIMG = 3
C16, C8, C4 = 64, 32, 16       # backbone feature channels at s16/s8/s4 (orig 2048/512/256)
CPM = 32                       # PixelLevelMatching embedding dim       (orig 512)
R16, RB = 32, 16               # REFINE conv_s16 out / blend out        (orig 256/128)


def _round_up(x, m):
    return ((x + m - 1) // m) * m


# =============================== Pallas kernels ===============================

# ---- fused tiled matmul: (M,K)@(K,N) + bias, optional ReLU or row-L2-norm epilogue ----
def _mm_kernel(x_ref, w_ref, b_ref, o_ref, acc_ref, *, relu, l2norm):
    @pl.when(pl.program_id(2) == 0)
    def _():
        acc_ref[...] = jnp.zeros_like(acc_ref)

    acc_ref[...] += jnp.dot(x_ref[...].astype(jnp.bfloat16),
                            w_ref[...].astype(jnp.bfloat16),
                            preferred_element_type=jnp.float32)

    @pl.when(pl.program_id(2) == pl.num_programs(2) - 1)
    def _():
        acc = acc_ref[...] + b_ref[...]
        if relu:
            acc = jnp.maximum(acc, 0.0)
        if l2norm:
            ss = jnp.sum(acc * acc, axis=-1, keepdims=True)
            acc = acc * lax.rsqrt(jnp.maximum(ss, 1e-12))
        o_ref[...] = acc


def pallas_matmul(x, w, b, relu=False, l2norm=False):
    """Tiled matmul + bias with fused ReLU or per-row L2-normalize epilogue."""
    M, K = x.shape
    N = w.shape[1]
    tm = min(256, _round_up(M, 8))
    tk = min(512, _round_up(K, 128))
    # l2norm epilogue needs the whole N extent inside one tile.
    tn = _round_up(N, 128) if l2norm else min(256, _round_up(N, 128))
    Mp, Kp, Np = _round_up(M, tm), _round_up(K, tk), _round_up(N, tn)
    xp = jnp.pad(x.astype(jnp.float32), ((0, Mp - M), (0, Kp - K)))
    wp = jnp.pad(w.astype(jnp.float32), ((0, Kp - K), (0, Np - N)))
    bp = jnp.pad(b.reshape(1, N).astype(jnp.float32), ((0, 0), (0, Np - N)))
    out = pl.pallas_call(
        functools.partial(_mm_kernel, relu=relu, l2norm=l2norm),
        grid=(Mp // tm, Np // tn, Kp // tk),
        in_specs=[pl.BlockSpec((tm, tk), lambda i, j, k: (i, k)),
                  pl.BlockSpec((tk, tn), lambda i, j, k: (k, j)),
                  pl.BlockSpec((1, tn), lambda i, j, k: (0, j))],
        out_specs=pl.BlockSpec((tm, tn), lambda i, j, k: (i, j)),
        out_shape=jax.ShapeDtypeStruct((Mp, Np), jnp.float32),
        scratch_shapes=[pltpu.VMEM((tm, tn), jnp.float32)],
        compiler_params=pltpu.CompilerParams(
            dimension_semantics=("parallel", "parallel", "arbitrary")),
    )(xp, wp, bp)
    return out[:M, :N]


# ---- batched pixel-matching correlation: all 6 reference states in one launch ----
def _corr_kernel(cfn_ref, refs_ref, ints_ref, o_ref):
    f = cfn_ref[0].astype(jnp.bfloat16)                      # (HW, CPM)
    cols = []
    for s in range(4):                                       # init_bg, init_fg, prev_bg, prev_fg
        r = refs_ref[0, s].astype(jnp.bfloat16)              # (CPM, HWr)  pre-transposed
        sc = jnp.dot(f, r, preferred_element_type=jnp.float32)
        cols.append(jnp.max(sc, axis=-1, keepdims=True))     # max over reference pixels
    sci = jnp.dot(f, ints_ref[0].astype(jnp.bfloat16),
                  preferred_element_type=jnp.float32)        # (HW, 2): int_bg, int_fg (no max)
    o_ref[0] = jnp.concatenate(cols + [sci], axis=-1)        # (HW, 6)


def pallas_pm_corr(cfn, refs_t, ints_t):
    """cfn: (B,HW,CPM); refs_t: (B,4,CPM,HWr); ints_t: (B,CPM,2) -> (B,HW,6)."""
    B, HW, C = cfn.shape
    # TODO(synk): at production resolutions (HW ~ 1600+) tile the (HW, HWr) score block.
    return pl.pallas_call(
        _corr_kernel,
        grid=(B,),
        in_specs=[pl.BlockSpec((1, HW, C), lambda b: (b, 0, 0)),
                  pl.BlockSpec((1, 4, C, HW), lambda b: (b, 0, 0, 0)),
                  pl.BlockSpec((1, C, 2), lambda b: (b, 0, 0))],
        out_specs=pl.BlockSpec((1, HW, 6), lambda b: (b, 0, 0)),
        out_shape=jax.ShapeDtypeStruct((B, HW, 6), jnp.float32),
        compiler_params=pltpu.CompilerParams(dimension_semantics=("parallel",)),
    )(cfn.astype(jnp.float32), refs_t.astype(jnp.float32), ints_t.astype(jnp.float32))


# ---- fused spatial + channel attention (shared qkv matmul, in-kernel softmaxes) ----
_TRANS_B = (((1,), (1,)), ((), ()))   # contract dim 1 with dim 1 (no explicit transpose)


def _sa_ca_kernel(x_ref, xt_ref, wqkv_ref, bqkv_ref, o_ref):
    x = x_ref[0]                                             # (HW, C)   tokens
    xt = xt_ref[0]                                           # (C, HW)   pre-transposed
    C = x.shape[1]
    qkv = jnp.dot(x.astype(jnp.bfloat16), wqkv_ref[...].astype(jnp.bfloat16),
                  preferred_element_type=jnp.float32) + bqkv_ref[...]
    q = qkv[:, 0:C]
    k = qkv[:, C:2 * C]
    v = qkv[:, 2 * C:3 * C]
    # spatial attention: softmax(q k^T) @ v
    e = lax.dot_general(q.astype(jnp.bfloat16), k.astype(jnp.bfloat16), _TRANS_B,
                        preferred_element_type=jnp.float32)              # (HW, HW)
    e = e - jnp.max(e, axis=-1, keepdims=True)
    p = jnp.exp(e)
    attn = p * pl.reciprocal(jnp.sum(p, axis=-1, keepdims=True), approx=True)
    sa = jnp.dot(attn.astype(jnp.bfloat16), v.astype(jnp.bfloat16),
                 preferred_element_type=jnp.float32)                     # (HW, C)
    # channel attention: softmax(max(E)-E) with E = X X^T over channels
    ec = jnp.dot(xt.astype(jnp.bfloat16), x.astype(jnp.bfloat16),
                 preferred_element_type=jnp.float32)                     # (C, C)
    ecn = jnp.max(ec, axis=-1, keepdims=True) - ec
    ecn = ecn - jnp.max(ecn, axis=-1, keepdims=True)
    pc = jnp.exp(ecn)
    attn_c = pc * pl.reciprocal(jnp.sum(pc, axis=-1, keepdims=True), approx=True)
    ca = lax.dot_general(x.astype(jnp.bfloat16), attn_c.astype(jnp.bfloat16), _TRANS_B,
                         preferred_element_type=jnp.float32)             # (HW, C)
    o_ref[0] = jnp.concatenate([sa, ca], axis=-1)                        # (HW, 2C)


def fused_attention(cor_bg, cor_fg, sa_p, ca_gamma):
    """Spatial + channel attention for bg and fg correlation maps in one pallas_call."""
    B, C, H, W = cor_bg.shape
    HW = H * W
    x_nchw = jnp.concatenate([cor_bg, cor_fg], axis=0)                   # (2B, C, H, W)
    x_chw = x_nchw.reshape(2 * B, C, HW)
    x_tok = x_chw.transpose(0, 2, 1)                                     # (2B, HW, C)
    wqkv = jnp.concatenate([sa_p['wq'].reshape(C, C).T,
                            sa_p['wk'].reshape(C, C).T,
                            sa_p['wv'].reshape(C, C).T], axis=1)         # (C, 3C)
    bqkv = jnp.concatenate([sa_p['bq'], sa_p['bk'], sa_p['bv']]).reshape(1, 3 * C)
    out = pl.pallas_call(
        _sa_ca_kernel,
        grid=(2 * B,),
        in_specs=[pl.BlockSpec((1, HW, C), lambda i: (i, 0, 0)),
                  pl.BlockSpec((1, C, HW), lambda i: (i, 0, 0)),
                  pl.BlockSpec((C, 3 * C), lambda i: (0, 0)),
                  pl.BlockSpec((1, 3 * C), lambda i: (0, 0))],
        out_specs=pl.BlockSpec((1, HW, 2 * C), lambda i: (i, 0, 0)),
        out_shape=jax.ShapeDtypeStruct((2 * B, HW, 2 * C), jnp.float32),
        compiler_params=pltpu.CompilerParams(dimension_semantics=("parallel",)),
    )(x_tok.astype(jnp.float32), x_chw.astype(jnp.float32),
      wqkv.astype(jnp.float32), bqkv.astype(jnp.float32))

    def to_nchw(t):
        return t.reshape(2 * B, H, W, C).transpose(0, 3, 1, 2)

    sa_out = sa_p['gamma'].reshape(1, 1, 1, 1) * to_nchw(out[:, :, :C]) + x_nchw
    ca_out = ca_gamma.reshape(1, 1, 1, 1) * to_nchw(out[:, :, C:]) + x_nchw
    return sa_out[:B], ca_out[:B], sa_out[B:], ca_out[B:]


# ================================ conv wrappers ================================

def _im2col(x, kh, kw, stride=1):
    B, C, H, W = x.shape
    OH = (H - kh) // stride + 1
    OW = (W - kw) // stride + 1
    cols = []
    for di in range(kh):
        for dj in range(kw):
            cols.append(x[:, :, di:di + (OH - 1) * stride + 1:stride,
                             dj:dj + (OW - 1) * stride + 1:stride])
    patches = jnp.stack(cols, axis=2)                          # (B, C, kh*kw, OH, OW)
    patches = patches.transpose(0, 3, 4, 1, 2).reshape(B, OH * OW, C * kh * kw)
    return patches, OH, OW


def conv2d(x, w, b, stride=1, padding=0, relu=False):
    """PyTorch-semantics Conv2d (NCHW); MAC hot path is the tiled Pallas matmul."""
    # TODO(synk): at production scale, accumulate the kh*kw taps inside the Pallas body
    # instead of materializing the im2col patches (9x HBM expansion) in glue.
    B, C, H, W = x.shape
    O, _, kh, kw = w.shape
    if padding:
        x = jnp.pad(x, ((0, 0), (0, 0), (padding, padding), (padding, padding)))
    patches, OH, OW = _im2col(x, kh, kw, stride)
    y = pallas_matmul(patches.reshape(B * OH * OW, C * kh * kw),
                      w.reshape(O, C * kh * kw).T, b, relu=relu)
    return y.reshape(B, OH, OW, O).transpose(0, 3, 1, 2)


def conv_transpose2d(x, w, b, stride, padding):
    """PyTorch ConvTranspose2d, weight (Cin, Cout, kh, kw).
    Matmul on the un-dilated input (Pallas) + col2im scatter-add in glue."""
    B, Cin, H, W = x.shape
    _, Cout, kh, kw = w.shape
    xt = x.transpose(0, 2, 3, 1).reshape(B * H * W, Cin)
    y = pallas_matmul(xt, w.reshape(Cin, Cout * kh * kw),
                      jnp.zeros((Cout * kh * kw,), jnp.float32))
    y = y.reshape(B, H, W, Cout, kh, kw)
    Hf = (H - 1) * stride + kh
    Wf = (W - 1) * stride + kw
    out = jnp.zeros((B, Cout, Hf, Wf), jnp.float32)
    for di in range(kh):
        for dj in range(kw):
            tap = y[:, :, :, :, di, dj].transpose(0, 3, 1, 2)            # (B, Cout, H, W)
            out = out.at[:, :, di:di + (H - 1) * stride + 1:stride,
                               dj:dj + (W - 1) * stride + 1:stride].add(tap)
    out = out[:, :, padding:Hf - padding, padding:Wf - padding]
    return out + b.reshape(1, Cout, 1, 1)


def avg_pool2d(x, k):
    B, C, H, W = x.shape
    return x.reshape(B, C, H // k, k, W // k, k).mean(axis=(3, 5))


# ================================== parameters ==================================

def _kaiming(key, shape):
    fan_in = int(np.prod(shape[1:]))
    bound = math.sqrt(6.0 / fan_in)
    return jax.random.uniform(key, shape, jnp.float32, -bound, bound)


def init_params(key):
    keys = iter(jax.random.split(key, 64))
    p = {}
    # TODO(synk): backbone (models.backbones.*) is undefined in the reference source;
    # substituted a deterministic strided-average-pool + 1x1-conv feature pyramid.
    p['backbone'] = {
        'w16': _kaiming(next(keys), (C16, CIMG, 1, 1)), 'b16': jnp.zeros((C16,)),
        'w8': _kaiming(next(keys), (C8, CIMG, 1, 1)),   'b8': jnp.zeros((C8,)),
        'w4': _kaiming(next(keys), (C4, CIMG, 1, 1)),   'b4': jnp.zeros((C4,)),
    }
    p['pm'] = {'w': _kaiming(next(keys), (CPM, C16, 1, 1)), 'b': jnp.zeros((CPM,))}
    p['sa'] = {
        'wq': _kaiming(next(keys), (3, 3, 1, 1)), 'bq': jnp.zeros((3,)),
        'wk': _kaiming(next(keys), (3, 3, 1, 1)), 'bk': jnp.zeros((3,)),
        'wv': _kaiming(next(keys), (3, 3, 1, 1)), 'bv': jnp.zeros((3,)),
        'gamma': jnp.zeros((1,)),
    }
    p['ca_gamma'] = jnp.zeros((1,))
    r = {}
    r['conv_s16_w'] = _kaiming(next(keys), (R16, C16, 1, 1));          r['conv_s16_b'] = jnp.zeros((R16,))
    r['blend_s16_w'] = _kaiming(next(keys), (RB, R16 + 12 + 2, 3, 3)); r['blend_s16_b'] = jnp.zeros((RB,))
    r['conv_s8_w'] = _kaiming(next(keys), (RB, C8, 1, 1));             r['conv_s8_b'] = jnp.zeros((RB,))
    r['blend_s8_w'] = _kaiming(next(keys), (RB, RB + 2, 3, 3));        r['blend_s8_b'] = jnp.zeros((RB,))
    r['conv_s4_w'] = _kaiming(next(keys), (RB, C4, 1, 1));             r['conv_s4_b'] = jnp.zeros((RB,))
    r['blend_s4_w'] = _kaiming(next(keys), (RB, RB + 2, 3, 3));        r['blend_s4_b'] = jnp.zeros((RB,))
    r['deconv1_1_w'] = _kaiming(next(keys), (RB, 2, 4, 4));            r['deconv1_1_b'] = jnp.zeros((2,))
    r['deconv1_2_w'] = _kaiming(next(keys), (2, 2, 4, 4));             r['deconv1_2_b'] = jnp.zeros((2,))
    r['deconv2_w'] = _kaiming(next(keys), (RB, 2, 4, 4));              r['deconv2_b'] = jnp.zeros((2,))
    r['deconv3_w'] = _kaiming(next(keys), (RB, 2, 3, 3));              r['deconv3_b'] = jnp.zeros((2,))
    r['predictor_w'] = _kaiming(next(keys), (6, 2, 6, 6));             r['predictor_b'] = jnp.zeros((2,))
    p['refine'] = r
    return p


# ============================ backbone (deterministic stub) ============================

def extract_feats(img, bp):
    return {
        's4': conv2d(avg_pool2d(img, 4),  bp['w4'],  bp['b4'],  relu=True),
        's8': conv2d(avg_pool2d(img, 8),  bp['w8'],  bp['b8'],  relu=True),
        's16': conv2d(avg_pool2d(img, 16), bp['w16'], bp['b16'], relu=True),
    }


# ============================== PixelLevelMatching ==============================

def pm_conv_feats_norm(feats_s16, pm):
    B, C, h, w = feats_s16.shape
    x = feats_s16.transpose(0, 2, 3, 1).reshape(B * h * w, C)
    y = pallas_matmul(x, pm['w'].reshape(CPM, C).T, pm['b'], l2norm=True)  # fused 1x1 conv + L2 norm
    return y.reshape(B, h * w, CPM)


def _one_pixel(pm_bg, pm_fg):
    # tiny (B,1,CPM) ops: keep in jnp so XLA fuses them (no Pallas launch overhead)
    op_bg = jnp.maximum(jnp.sum(pm_bg, axis=1, keepdims=True), 1e-7)
    op_fg = jnp.maximum(jnp.sum(pm_fg, axis=1, keepdims=True), 1e-7)
    op_bg = op_bg / jnp.linalg.norm(op_bg, axis=-1, keepdims=True)
    op_fg = op_fg / jnp.linalg.norm(op_fg, axis=-1, keepdims=True)
    return op_bg, op_fg


def vos_get_init_state(feats_s16, given_seg, pm):
    B, _, h, w = feats_s16.shape
    cfn = pm_conv_feats_norm(feats_s16, pm)
    bg = given_seg[:, 0].reshape(B, h * w, 1)
    fg = given_seg[:, 1].reshape(B, h * w, 1)
    pm_bg, pm_fg = cfn * bg, cfn * fg
    op_bg, op_fg = _one_pixel(pm_bg, pm_fg)
    return {'pm_init': [pm_bg, pm_fg], 'pm_prev': [pm_bg, pm_fg],
            'pm_int': [op_bg, op_fg], 'prev_seg': given_seg}


def pm_forward(feats_s16, st, pm):
    B, _, h, w = feats_s16.shape
    cfn = pm_conv_feats_norm(feats_s16, pm)                               # (B, hw, CPM)
    init_bg, init_fg = st['pm_init']
    prev_bg, prev_fg = st['pm_prev']
    int_bg, int_fg = st['pm_int']
    refs_t = jnp.stack([init_bg, init_fg, prev_bg, prev_fg],
                       axis=1).transpose(0, 1, 3, 2)                      # (B,4,CPM,hw)
    ints_t = jnp.concatenate([int_bg, int_fg], axis=1).transpose(0, 2, 1)  # (B,CPM,2)
    scores = pallas_pm_corr(cfn, refs_t, ints_t)                          # (B, hw, 6)
    sm = scores.reshape(B, h, w, 6).transpose(0, 3, 1, 2)                 # (B, 6, h, w)
    cor_bg = jnp.stack([sm[:, 0], sm[:, 2], sm[:, 4]], axis=1)            # init/prev/int bg
    cor_fg = jnp.stack([sm[:, 1], sm[:, 3], sm[:, 5]], axis=1)            # init/prev/int fg
    return cor_bg, cor_fg, cfn


def vos_update(cfn, pred_seg, st):
    B, _, h, w = pred_seg.shape
    bg = pred_seg[:, 0].reshape(B, h * w, 1)
    fg = pred_seg[:, 1].reshape(B, h * w, 1)
    pm_bg, pm_fg = cfn * bg, cfn * fg
    op_bg, op_fg = _one_pixel(pm_bg, pm_fg)
    int_bg, int_fg = st['pm_int']
    return {'pm_init': st['pm_init'],
            'pm_prev': [pm_bg, pm_fg],
            'pm_int': [0.9 * int_bg + 0.1 * op_bg, 0.9 * int_fg + 0.1 * op_fg],
            'prev_seg': pred_seg}


# ==================================== REFINE ====================================

def refine_forward(feats, sa_bg, ca_bg, sa_fg, ca_fg, prev_seg, p):
    u = jnp.concatenate([conv2d(feats['s16'], p['conv_s16_w'], p['conv_s16_b'], relu=True),
                         sa_bg, ca_bg, sa_fg, ca_fg, prev_seg], axis=-3)
    u = conv2d(u, p['blend_s16_w'], p['blend_s16_b'], 1, 1, relu=True)
    out_16 = conv_transpose2d(u, p['deconv1_1_w'], p['deconv1_1_b'], 2, 1)
    u = jnp.concatenate([conv2d(feats['s8'], p['conv_s8_w'], p['conv_s8_b'], relu=True),
                         out_16], axis=-3)
    u = conv2d(u, p['blend_s8_w'], p['blend_s8_b'], 1, 1, relu=True)
    out_8 = conv_transpose2d(u, p['deconv2_w'], p['deconv2_b'], 2, 1)
    u = jnp.concatenate([conv2d(feats['s4'], p['conv_s4_w'], p['conv_s4_b'], relu=True),
                         out_8], axis=-3)
    u = conv2d(u, p['blend_s4_w'], p['blend_s4_b'], 1, 1, relu=True)
    out_4 = conv_transpose2d(u, p['deconv3_w'], p['deconv3_b'], 1, 1)
    cat = jnp.concatenate([conv_transpose2d(out_16, p['deconv1_2_w'], p['deconv1_2_b'], 2, 1),
                           out_8, out_4], axis=1)
    return conv_transpose2d(cat, p['predictor_w'], p['predictor_b'], 4, 1)


# ====================================== VOS ======================================

def vos_forward(feats, state, object_ids, params):
    segscore, cfns = {}, {}
    for oid in object_ids:
        st = state[oid]
        cor_bg, cor_fg, cfn = pm_forward(feats['s16'], st, params['pm'])
        cfns[oid] = cfn
        sa_bg, ca_bg, sa_fg, ca_fg = fused_attention(cor_bg, cor_fg,
                                                     params['sa'], params['ca_gamma'])
        segscore[oid] = refine_forward(feats, sa_bg, ca_bg, sa_fg, ca_fg,
                                       st['prev_seg'], params['refine'])
    return segscore, cfns


def softmax_aggregate(predicted_seg, object_ids):
    bg_seg = jnp.min(jnp.stack([predicted_seg[n][:, 0, :, :] for n in object_ids], axis=1), axis=1)
    bg_seg = jnp.stack([1.0 - bg_seg, bg_seg], axis=1)
    items = [(-1, bg_seg)] + [(n, predicted_seg[n]) for n in object_ids]
    logits = {n: jnp.clip(seg[:, 1:, :, :], 1e-7, 1 - 1e-7) /
                 jnp.clip(seg[:, 0, :, :], 1e-7, 1 - 1e-7) for n, seg in items}
    logits_sum = jnp.concatenate([logits[n] for n in [-1] + object_ids],
                                 axis=1).sum(axis=1, keepdims=True)
    aggregated_lst = [logits[n] / logits_sum for n in [-1] + object_ids]
    aggregated_inv_lst = [1.0 - e for e in aggregated_lst]
    aggregated = jnp.concatenate([e for pair in zip(aggregated_inv_lst, aggregated_lst)
                                  for e in pair], axis=-3)
    final_seg_wrongids = jnp.argmax(aggregated[:, 1::2, :, :], axis=-3,
                                    keepdims=True).astype(jnp.int32)
    final_seg = jnp.zeros_like(final_seg_wrongids)
    for idx, obj_idx in enumerate(object_ids):
        final_seg = jnp.where(final_seg_wrongids == idx + 1, obj_idx, final_seg)
    agg = {obj: aggregated[:, 2 * (idx + 1):2 * (idx + 2), :, :]
           for idx, obj in enumerate(object_ids)}
    return final_seg, agg


# -------------------------- per-frame jitted step functions --------------------------

@functools.partial(jax.jit, static_argnames=('object_ids',))
def init_states(frame0, init_label, params, object_ids):
    feats = extract_feats(frame0, params['backbone'])
    state = {}
    for oid in object_ids:
        gs = jnp.concatenate([(init_label != oid), (init_label == oid)],
                             axis=-3).astype(jnp.float32)
        state[oid] = vos_get_init_state(feats['s16'], avg_pool2d(gs, 16), params['pm'])
    return state


@functools.partial(jax.jit, static_argnames=('object_ids',))
def frame_step(frame, state, params, object_ids):
    oids = list(object_ids)
    feats = extract_feats(frame, params['backbone'])
    segscore, cfns = vos_forward(feats, state, oids, params)
    predicted_seg = {k: jax.nn.softmax(segscore[k], axis=1) for k in oids}
    output_seg, aggregated_seg = softmax_aggregate(predicted_seg, oids)
    new_state = {}
    for k in oids:
        upd = avg_pool2d(aggregated_seg[k], 16)
        new_state[k] = vos_update(cfns[k], upd, state[k])
    return new_state, output_seg


# ============================ PMVOS top-level forward ============================

def get_required_padding(height, width, div):
    hp = (div - height % div) % div
    wp = (div - width % div) % div
    return [(wp + 1) // 2, wp // 2, (hp + 1) // 2, hp // 2]


def apply_padding(x, y, padding):
    B, L, C, H, W = x.shape
    pw = ((0, 0), (0, 0), (padding[2], padding[3]), (padding[0], padding[1]))
    x = jnp.pad(x.reshape(B * L, C, H, W), pw, mode='reflect')
    x = x.reshape(B, L, C, x.shape[-2], x.shape[-1])
    y = [jnp.pad(lab.astype(jnp.float32), pw, mode='reflect').astype(jnp.int32)
         if lab is not None else None for lab in y]
    return x, y


def unpad(t, padding):
    H, W = t.shape[-2], t.shape[-1]
    return t[:, :, :, padding[2]:H - padding[3], padding[0]:W - padding[1]]


def pmvos_forward(x, given_labels, params):
    B, L, C, prepad_h, prepad_w = x.shape
    padding = get_required_padding(prepad_h, prepad_w, 16)
    if tuple(padding) != (0, 0, 0, 0):
        x, given_labels = apply_padding(x, given_labels, padding)
    frames = [x[:, i] for i in range(L)]
    init_label = given_labels[0]
    # object-id discovery is host-side (data-dependent control flow)
    object_ids = tuple(int(v) for v in np.unique(np.asarray(init_label)) if int(v) != 0)
    state = init_states(frames[0], init_label, params, object_ids=object_ids)
    seg_lst = [init_label]
    for i in range(1, L):
        state, output_seg = frame_step(frames[i], state, params, object_ids=object_ids)
        seg_lst.append(output_seg)
    segs = jnp.stack(seg_lst, axis=1)
    segs = unpad(segs, padding)
    return {'segs': segs}, state


# ====================================== main ======================================

if __name__ == "__main__":
    key = jax.random.PRNGKey(0)
    kx, kp = jax.random.split(key)

    # x: (batch=1, frames=2, channels=3, H=32, W=32)  (divisible by 16 -> no reflect pad)
    x = jax.random.normal(kx, (1, 2, CIMG, 32, 32), jnp.float32)
    init_label = jnp.zeros((1, 1, 32, 32), jnp.int32)
    init_label = init_label.at[:, :, 8:20, 6:18].set(1)
    init_label = init_label.at[:, :, 4:12, 20:30].set(2)
    given_labels = [init_label, None]

    params = init_params(kp)

    out, state = pmvos_forward(x, given_labels, params)
    segs = jax.block_until_ready(out['segs'])
    assert segs.shape == (1, 2, 1, 32, 32), segs.shape
    assert not bool(jnp.any(jnp.isnan(segs.astype(jnp.float32))))
    print("KERNEL_OK")
</pallas_src>

<mosaic_0001>
module attributes {stable_mosaic.version = 11 : i64} {
  func.func @_mm_kernel(%arg0: i32, %arg1: i32, %arg2: i32, %arg3: memref<8x128xf32, #tpu.memory_space<vmem>>, %arg4: memref<128x128xf32, #tpu.memory_space<vmem>>, %arg5: memref<1x128xf32, #tpu.memory_space<vmem>>, %arg6: memref<8x128xf32, #tpu.memory_space<vmem>>, %arg7: memref<8x128xf32, #tpu.memory_space<vmem>>) attributes {dimension_semantics = [#tpu.dimension_semantics<parallel>, #tpu.dimension_semantics<parallel>, #tpu.dimension_semantics<arbitrary>], iteration_bounds = array<i64: 1, 1, 1>, scalar_prefetch = 0 : i64, scratch_operands = 1 : i64, tpu.core_type = #tpu.core_type<tc>, window_params = [{transform_indices = @transform_0, window_bounds = array<i64: 8, 128>}, {transform_indices = @transform_1, window_bounds = array<i64: 128, 128>}, {transform_indices = @transform_2, window_bounds = array<i64: 1, 128>}, {transform_indices = @transform_3, window_bounds = array<i64: 8, 128>}]} {
    %c0_i32 = arith.constant 0 : i32
    %0 = arith.cmpi eq, %arg2, %c0_i32 : i32
    %1 = arith.extui %0 : i1 to i32
    %c0_i32_0 = arith.constant 0 : i32
    %2 = arith.cmpi ne, %1, %c0_i32_0 : i32
    scf.if %2 {
      %cst_10 = arith.constant 0.000000e+00 : f32
      %14 = vector.broadcast %cst_10 : f32 to vector<8x128xf32>
      %c0_11 = arith.constant 0 : index
      %c0_12 = arith.constant 0 : index
      %15 = vector.load %arg7[%c0_11, %c0_12] : memref<8x128xf32, #tpu.memory_space<vmem>>, vector<8x128xf32>
      tpu.vector_store %arg7[%c0_11, %c0_12], %14 {strides = array<i32>} : memref<8x128xf32, #tpu.memory_space<vmem>>, vector<8x128xf32>,
    } else {
    }
    %c0 = arith.constant 0 : index
    %c0_1 = arith.constant 0 : index
    %3 = vector.load %arg7[%c0, %c0_1] : memref<8x128xf32, #tpu.memory_space<vmem>>, vector<8x128xf32>
    %c0_2 = arith.constant 0 : index
    %c0_3 = arith.constant 0 : index
    %4 = vector.load %arg3[%c0_2, %c0_3] : memref<8x128xf32, #tpu.memory_space<vmem>>, vector<8x128xf32>
    %5 = arith.truncf %4 : vector<8x128xf32> to vector<8x128xbf16>
    %c0_4 = arith.constant 0 : index
    %c0_5 = arith.constant 0 : index
    %6 = vector.load %arg4[%c0_4, %c0_5] : memref<128x128xf32, #tpu.memory_space<vmem>>, vector<128x128xf32>
    %7 = arith.truncf %6 : vector<128x128xf32> to vector<128x128xbf16>
    %cst = arith.constant dense<0.000000e+00> : vector<8x128xf32>
    %8 = tpu.matmul %5, %7, %cst {dimension_numbers = #tpu.dot_dimension_numbers<[1], [0], [0], [1], [0, 0, 1, 1], [], []>} : vector<8x128xbf16>, vector<128x128xbf16>, vector<8x128xf32> -> vector<8x128xf32>
    %9 = arith.addf %3, %8 : vector<8x128xf32>
    %c0_6 = arith.constant 0 : index
    %c0_7 = arith.constant 0 : index
    %10 = vector.load %arg7[%c0_6, %c0_7] : memref<8x128xf32, #tpu.memory_space<vmem>>, vector<8x128xf32>
    tpu.vector_store %arg7[%c0_6, %c0_7], %9 {strides = array<i32>} : memref<8x128xf32, #tpu.memory_space<vmem>>, vector<8x128xf32>,
    %c0_i32_8 = arith.constant 0 : i32
    %11 = arith.cmpi eq, %arg2, %c0_i32_8 : i32
    %12 = arith.extui %11 : i1 to i32
    %c0_i32_9 = arith.constant 0 : i32
    %13 = arith.cmpi ne, %12, %c0_i32_9 : i32
    scf.if %13 {
      %c0_10 = arith.constant 0 : index
      %c0_11 = arith.constant 0 : index
      %14 = vector.load %arg7[%c0_10, %c0_11] : memref<8x128xf32, #tpu.memory_space<vmem>>, vector<8x128xf32>
      %c0_12 = arith.constant 0 : index
      %c0_13 = arith.constant 0 : index
      %15 = vector.load %arg5[%c0_12, %c0_13] : memref<1x128xf32, #tpu.memory_space<vmem>>, vector<1x128xf32>
      %16 = vector.broadcast %15 : vector<1x128xf32> to vector<8x128xf32>
      %17 = arith.addf %14, %16 : vector<8x128xf32>
      %cst_14 = arith.constant 0.000000e+00 : f32
      %18 = vector.broadcast %cst_14 : f32 to vector<8x128xf32>
      %19 = arith.maximumf %17, %18 : vector<8x128xf32>
      %c0_15 = arith.constant 0 : index
      %c0_16 = arith.constant 0 : index
      %20 = vector.load %arg6[%c0_15, %c0_16] : memref<8x128xf32, #tpu.memory_space<vmem>>, vector<8x128xf32>
      tpu.vector_store %arg6[%c0_15, %c0_16], %19 {strides = array<i32>} : memref<8x128xf32, #tpu.memory_space<vmem>>, vector<8x128xf32>,
    } else {
    }
    return
  }
  func.func @transform_0(%arg0: i32, %arg1: i32, %arg2: i32) -> (i32, i32) {
    %c0_i32 = arith.constant 0 : i32
    return %arg0, %arg2 : i32, i32
  }
  func.func @transform_1(%arg0: i32, %arg1: i32, %arg2: i32) -> (i32, i32) {
    %c0_i32 = arith.constant 0 : i32
    return %arg2, %arg1 : i32, i32
  }
  func.func @transform_2(%arg0: i32, %arg1: i32, %arg2: i32) -> (i32, i32) {
    %c0_i32 = arith.constant 0 : i32
    %c0_i32_0 = arith.constant 0 : i32
    return %c0_i32, %arg1 : i32, i32
  }
  func.func @transform_3(%arg0: i32, %arg1: i32, %arg2: i32) -> (i32, i32) {
    %c0_i32 = arith.constant 0 : i32
    return %arg0, %arg1 : i32, i32
  }
}

module attributes {stable_mosaic.version = 11 : i64} {
  func.func @_mm_kernel(%arg0: i32, %arg1: i32, %arg2: i32, %arg3: memref<8x128xf32, #tpu.memory_space<vmem>>, %arg4: memref<128x128xf32, #tpu.memory_space<vmem>>, %arg5: memref<1x128xf32, #tpu.memory_space<vmem>>, %arg6: memref<8x128xf32, #tpu.memory_space<vmem>>, %arg7: memref<8x128xf32, #tpu.memory_space<vmem>>) attributes {dimension_semantics = [#tpu.dimension_semantics<parallel>, #tpu.dimension_semantics<parallel>, #tpu.dimension_semantics<arbitrary>], iteration_bounds = array<i64: 1, 1, 1>, scalar_prefetch = 0 : i64, scratch_operands = 1 : i64, tpu.core_type = #tpu.core_type<tc>, window_params = [{transform_indices = @transform_0, window_bounds = array<i64: 8, 128>}, {transform_indices = @transform_1, window_bounds = array<i64: 128, 128>}, {transform_indices = @transform_2, window_bounds = array<i64: 1, 128>}, {transform_indices = @transform_3, window_bounds = array<i64: 8, 128>}]} {
    %c0_i32 = arith.constant 0 : i32
    %0 = arith.cmpi eq, %arg2, %c0_i32 : i32
    %1 = arith.extui %0 : i1 to i32
    %c0_i32_0 = arith.constant 0 : i32
    %2 = arith.cmpi ne, %1, %c0_i32_0 : i32
    scf.if %2 {
      %cst_10 = arith.constant 0.000000e+00 : f32
      %14 = vector.broadcast %cst_10 : f32 to vector<8x128xf32>
      %c0_11 = arith.constant 0 : index
      %c0_12 = arith.constant 0 : index
      %15 = vector.load %arg7[%c0_11, %c0_12] : memref<8x128xf32, #tpu.memory_space<vmem>>, vector<8x128xf32>
      tpu.vector_store %arg7[%c0_11, %c0_12], %14 {strides = array<i32>} : memref<8x128xf32, #tpu.memory_space<vmem>>, vector<8x128xf32>,
    } else {
    }
    %c0 = arith.constant 0 : index
    %c0_1 = arith.constant 0 : index
    %3 = vector.load %arg7[%c0, %c0_1] : memref<8x128xf32, #tpu.memory_space<vmem>>, vector<8x128xf32>
    %c0_2 = arith.constant 0 : index
    %c0_3 = arith.constant 0 : index
    %4 = vector.load %arg3[%c0_2, %c0_3] : memref<8x128xf32, #tpu.memory_space<vmem>>, vector<8x128xf32>
    %5 = arith.truncf %4 : vector<8x128xf32> to vector<8x128xbf16>
    %c0_4 = arith.constant 0 : index
    %c0_5 = arith.constant 0 : index
    %6 = vector.load %arg4[%c0_4, %c0_5] : memref<128x128xf32, #tpu.memory_space<vmem>>, vector<128x128xf32>
    %7 = arith.truncf %6 : vector<128x128xf32> to vector<128x128xbf16>
    %cst = arith.constant dense<0.000000e+00> : vector<8x128xf32>
    %8 = tpu.matmul %5, %7, %cst {dimension_numbers = #tpu.dot_dimension_numbers<[1], [0], [0], [1], [0, 0, 1, 1], [], []>} : vector<8x128xbf16>, vector<128x128xbf16>, vector<8x128xf32> -> vector<8x128xf32>
    %9 = arith.addf %3, %8 : vector<8x128xf32>
    %c0_6 = arith.constant 0 : index
    %c0_7 = arith.constant 0 : index
    %10 = vector.load %arg7[%c0_6, %c0_7] : memref<8x128xf32, #tpu.memory_space<vmem>>, vector<8x128xf32>
    tpu.vector_store %arg7[%c0_6, %c0_7], %9 {strides = array<i32>} : memref<8x128xf32, #tpu.memory_space<vmem>>, vector<8x128xf32>,
    %c0_i32_8 = arith.constant 0 : i32
    %11 = arith.cmpi eq, %arg2, %c0_i32_8 : i32
    %12 = arith.extui %11 : i1 to i32
    %c0_i32_9 = arith.constant 0 : i32
    %13 = arith.cmpi ne, %12, %c0_i32_9 : i32
    scf.if %13 {
      %c0_10 = arith.constant 0 : index
      %c0_11 = arith.constant 0 : index
      %14 = vector.load %arg7[%c0_10, %c0_11] : memref<8x128xf32, #tpu.memory_space<vmem>>, vector<8x128xf32>
      %c0_12 = arith.constant 0 : index
      %c0_13 = arith.constant 0 : index
      %15 = vector.load %arg5[%c0_12, %c0_13] : memref<1x128xf32, #tpu.memory_space<vmem>>, vector<1x128xf32>
      %16 = vector.broadcast %15 : vector<1x128xf32> to vector<8x128xf32>
      %17 = arith.addf %14, %16 : vector<8x128xf32>
      %18 = arith.mulf %17, %17 : vector<8x128xf32>
      %cst_14 = arith.constant dense<0.000000e+00> : vector<8xf32>
      %19 = vector.multi_reduction <add>, %18, %cst_14 [1] : vector<8x128xf32> to vector<8xf32>
      %20 = vector.shape_cast %19 : vector<8xf32> to vector<8x1xf32>
      %cst_15 = arith.constant 9.99999996E-13 : f32
      %21 = vector.broadcast %cst_15 : f32 to vector<8x1xf32>
      %22 = arith.maximumf %20, %21 : vector<8x1xf32>
      %23 = math.rsqrt %22 : vector<8x1xf32>
      %24 = vector.broadcast %23 : vector<8x1xf32> to vector<8x128xf32>
      %25 = arith.mulf %17, %24 : vector<8x128xf32>
      %c0_16 = arith.constant 0 : index
      %c0_17 = arith.constant 0 : index
      %26 = vector.load %arg6[%c0_16, %c0_17] : memref<8x128xf32, #tpu.memory_space<vmem>>, vector<8x128xf32>
      tpu.vector_store %arg6[%c0_16, %c0_17], %25 {strides = array<i32>} : memref<8x128xf32, #tpu.memory_space<vmem>>, vector<8x128xf32>,
    } else {
    }
    return
  }
  func.func @transform_0(%arg0: i32, %arg1: i32, %arg2: i32) -> (i32, i32) {
    %c0_i32 = arith.constant 0 : i32
    return %arg0, %arg2 : i32, i32
  }
  func.func @transform_1(%arg0: i32, %arg1: i32, %arg2: i32) -> (i32, i32) {
    %c0_i32 = arith.constant 0 : i32
    return %arg2, %arg1 : i32, i32
  }
  func.func @transform_2(%arg0: i32, %arg1: i32, %arg2: i32) -> (i32, i32) {
    %c0_i32 = arith.constant 0 : i32
    %c0_i32_0 = arith.constant 0 : i32
    return %c0_i32, %arg1 : i32, i32
  }
  func.func @transform_3(%arg0: i32, %arg1: i32, %arg2: i32) -> (i32, i32) {
    %c0_i32 = arith.constant 0 : i32
    return %arg0, %arg1 : i32, i32
  }
}

</mosaic_0001>

<bundles_post_ra>
// kernel: init_states.4
= control target key start
LH: loop header
LB: loop body
LE: loop exit
PB: predicated region body
PF: predicated region fallthrough
CT: control target
= control target key end

     0   :  { %v146_v0 = vmov 0.0   ;;  %vm147_vm0 = vmmov 0   ;;  %s225_s1 = inlined_call_operand.vmem [shape: f32[128,128], index: 1, kind: input, shape index: {}]   ;;  %s226_s0 = inlined_call_operand.vmem [shape: f32[8,128], index: 0, kind: input, shape index: {}]   ;;  %s227_s2 = inlined_call_operand.vmem [shape: f32[1,128], index: 2, kind: input, shape index: {}]   ;;  %s228_s3 = inlined_call_operand.vmem [shape: f32[8,128], index: 3, kind: output, shape index: {}]  }
   0x1   :  { %122 = vmatprep.subr.bf16.mxu0 %v146_v0  ;;  %v23_v1 = vld [vmem:[%s225_s1] sm:$0xff]  ;;  %v24_v2 = vld [vmem:[%s225_s1 + $0x8] sm:$0xff]  ;;  %v25_v3 = vld [vmem:[%s225_s1 + $0x10] sm:$0xff]  ;;  %138 = vmatprep.mubr.msk.bf16.mxu0 %vm147_vm0, %v146_v0 }
   0x2   :  { %v39_v4 = vpack.c.bf16 %v24_v2, %v23_v1  ;;  %v26_v5 = vld [vmem:[%s225_s1 + $0x18] sm:$0xff]  ;;  %v27_v7 = vld [vmem:[%s225_s1 + $0x20] sm:$0xff]  ;;  %v28_v8 = vld [vmem:[%s225_s1 + $0x28] sm:$0xff] }
   0x3   :  { %v40_v6 = vpack.c.bf16 %v26_v5, %v25_v3  ;;  %v41_v9 = vpack.c.bf16 %v28_v8, %v27_v7  ;;  %v29_v10 = vld [vmem:[%s225_s1 + $0x30] sm:$0xff]  ;;  %v30_v11 = vld [vmem:[%s225_s1 + $0x38] sm:$0xff]  ;;  %v31_v13 = vld [vmem:[%s225_s1 + $0x40] sm:$0xff] }
   0x4   :  { %123 = vmatpush3.bf16.msra.mxu0 %v39_v4  ;;  %v42_v12 = vpack.c.bf16 %v30_v11, %v29_v10  ;;  %v32_v14 = vld [vmem:[%s225_s1 + $0x48] sm:$0xff]  ;;  %v33_v16 = vld [vmem:[%s225_s1 + $0x50] sm:$0xff]  ;;  %v34_v17 = vld [vmem:[%s225_s1 + $0x58] sm:$0xff] }
   0x5   :  { %124 = vmatprep.subr.bf16.mxu0 %v146_v0  ;;  %v43_v15 = vpack.c.bf16 %v32_v14, %v31_v13  ;;  %v44_v18 = vpack.c.bf16 %v34_v17, %v33_v16  ;;  %v35_v19 = vld [vmem:[%s225_s1 + $0x60] sm:$0xff]  ;;  %v36_v20 = vld [vmem:[%s225_s1 + $0x68] sm:$0xff]  ;;  %v37_v22 = vld [vmem:[%s225_s1 + $0x70] sm:$0xff] }
   0x6   :  { %v45_v21 = vpack.c.bf16 %v36_v20, %v35_v19  ;;  %v38_v23 = vld [vmem:[%s225_s1 + $0x78] sm:$0xff]  ;;  %v21_v25 = vld [vmem:[%s226_s0] sm:$0xff] }
   0x7   :  { %v46_v24 = vpack.c.bf16 %v38_v23, %v37_v22  ;;  %v22_v26 = vpack.c.bf16 %v21_v25, %v21_v25  ;;  %v112_v27 = vld [vmem:[%s227_s2] ss:$0 sm:$0xff] }
   0x8   :  { %125 = vmatpush3.bf16.msra.mxu0 %v40_v6 }
   0x9   :  { %126 = vmatprep.subr.bf16.mxu0 %v146_v0 }
   0xc   :  { %127 = vmatpush3.bf16.msra.mxu0 %v41_v9 }
   0xd   :  { %128 = vmatprep.subr.bf16.mxu0 %v146_v0 }
  0x10   :  { %129 = vmatpush3.bf16.msra.mxu0 %v42_v12 }
  0x11   :  { %130 = vmatprep.subr.bf16.mxu0 %v146_v0 }
  0x14   :  { %131 = vmatpush3.bf16.msra.mxu0 %v43_v15 }
  0x15   :  { %132 = vmatprep.subr.bf16.mxu0 %v146_v0 }
  0x18   :  { %133 = vmatpush3.bf16.msra.mxu0 %v44_v18 }
  0x19   :  { %134 = vmatprep.subr.bf16.mxu0 %v146_v0 }
  0x1c   :  { %135 = vmatpush3.bf16.msra.mxu0 %v45_v21 }
  0x1d   :  { %136 = vmatprep.subr.bf16.mxu0 %v146_v0 }
  0x20   :  { %137 = vmatpush3.bf16.msra.mxu0 %v46_v24 }
  0x23   :  { %139 = vmatmul.mubr.bf16.vlgmr.msra.gmra.mrb[0].mxu0 %v22_v26 }
  0xf6   :  { %v81_v28 = vpop.f32.mrb[0].mxu0 }
  0xf7   :  { %v100_v29 = vadd.f32 %v112_v27, %v81_v28  ;;  %v140_v30 = vpop.f32.mrb[1].mxu0 }
  0xf8   :  { %v84_v31 = vpop.f32.mrb[2].mxu0 }
  0xf9   :  { %v141_v32 = vpop.f32.mrb[3].mxu0  ;;  %v101_v33 = vmul.f32 %v100_v29, %v100_v29 }
  0xfb   :  { %102 = vadd.xlane.f32.xlu0 %v101_v33 }
 0x188   :  { %v103_v34 = vpop.xlane.xlu0 %102 }
 0x189   :  { %v104_v35 = vmax.f32 %v103_v34, 1e-12 }
 0x18b   :  { %144 = vrsqrt.f32 %v104_v35 }
 0x195   :  { %v145_v36 = vpop.eup %144 }
 0x196   :  { %v106_v37 = vmul.f32 %v145_v36, %v100_v29 }
 0x198   :  { %107 = vst [vmem:[%s228_s3] sm:$0xff] %v106_v37 }

// kernel: init_states.3
= control target key start
LH: loop header
LB: loop body
LE: loop exit
PB: predicated region body
PF: predicated region fallthrough
CT: control target
= control target key end

     0   :  { %v139_v0 = vmov 0.0   ;;  %vm140_vm0 = vmmov 0   ;;  %s218_s1 = inlined_call_operand.vmem [shape: f32[128,128], index: 1, kind: input, shape index: {}]   ;;  %s219_s0 = inlined_call_operand.vmem [shape: f32[8,128], index: 0, kind: input, shape index: {}]   ;;  %s220_s2 = inlined_call_operand.vmem [shape: f32[1,128], index: 2, kind: input, shape index: {}]   ;;  %s221_s3 = inlined_call_operand.vmem [shape: f32[8,128], index: 3, kind: output, shape index: {}]  }
   0x1   :  { %117 = vmatprep.subr.bf16.mxu0 %v139_v0  ;;  %v23_v1 = vld [vmem:[%s218_s1] sm:$0xff]  ;;  %v24_v2 = vld [vmem:[%s218_s1 + $0x8] sm:$0xff]  ;;  %v25_v3 = vld [vmem:[%s218_s1 + $0x10] sm:$0xff]  ;;  %133 = vmatprep.mubr.msk.bf16.mxu0 %vm140_vm0, %v139_v0 }
   0x2   :  { %v39_v4 = vpack.c.bf16 %v24_v2, %v23_v1  ;;  %v26_v5 = vld [vmem:[%s218_s1 + $0x18] sm:$0xff]  ;;  %v27_v7 = vld [vmem:[%s218_s1 + $0x20] sm:$0xff]  ;;  %v28_v8 = vld [vmem:[%s218_s1 + $0x28] sm:$0xff] }
   0x3   :  { %v40_v6 = vpack.c.bf16 %v26_v5, %v25_v3  ;;  %v41_v9 = vpack.c.bf16 %v28_v8, %v27_v7  ;;  %v29_v10 = vld [vmem:[%s218_s1 + $0x30] sm:$0xff]  ;;  %v30_v11 = vld [vmem:[%s218_s1 + $0x38] sm:$0xff]  ;;  %v31_v13 = vld [vmem:[%s218_s1 + $0x40] sm:$0xff] }
   0x4   :  { %118 = vmatpush3.bf16.msra.mxu0 %v39_v4  ;;  %v42_v12 = vpack.c.bf16 %v30_v11, %v29_v10  ;;  %v32_v14 = vld [vmem:[%s218_s1 + $0x48] sm:$0xff]  ;;  %v33_v16 = vld [vmem:[%s218_s1 + $0x50] sm:$0xff]  ;;  %v34_v17 = vld [vmem:[%s218_s1 + $0x58] sm:$0xff] }
   0x5   :  { %119 = vmatprep.subr.bf16.mxu0 %v139_v0  ;;  %v43_v15 = vpack.c.bf16 %v32_v14, %v31_v13  ;;  %v44_v18 = vpack.c.bf16 %v34_v17, %v33_v16  ;;  %v35_v19 = vld [vmem:[%s218_s1 + $0x60] sm:$0xff]  ;;  %v36_v20 = vld [vmem:[%s218_s1 + $0x68] sm:$0xff]  ;;  %v37_v22 = vld [vmem:[%s218_s1 + $0x70] sm:$0xff] }
   0x6   :  { %v45_v21 = vpack.c.bf16 %v36_v20, %v35_v19  ;;  %v38_v23 = vld [vmem:[%s218_s1 + $0x78] sm:$0xff]  ;;  %v21_v25 = vld [vmem:[%s219_s0] sm:$0xff] }
   0x7   :  { %v46_v24 = vpack.c.bf16 %v38_v23, %v37_v22  ;;  %v22_v26 = vpack.c.bf16 %v21_v25, %v21_v25  ;;  %v107_v27 = vld [vmem:[%s220_s2] ss:$0 sm:$0xff] }
   0x8   :  { %120 = vmatpush3.bf16.msra.mxu0 %v40_v6 }
   0x9   :  { %121 = vmatprep.subr.bf16.mxu0 %v139_v0 }
   0xc   :  { %122 = vmatpush3.bf16.msra.mxu0 %v41_v9 }
   0xd   :  { %123 = vmatprep.subr.bf16.mxu0 %v139_v0 }
  0x10   :  { %124 = vmatpush3.bf16.msra.mxu0 %v42_v12 }
  0x11   :  { %125 = vmatprep.subr.bf16.mxu0 %v139_v0 }
  0x14   :  { %126 = vmatpush3.bf16.msra.mxu0 %v43_v15 }
  0x15   :  { %127 = vmatprep.subr.bf16.mxu0 %v139_v0 }
  0x18   :  { %128 = vmatpush3.bf16.msra.mxu0 %v44_v18 }
  0x19   :  { %129 = vmatprep.subr.bf16.mxu0 %v139_v0 }
  0x1c   :  { %130 = vmatpush3.bf16.msra.mxu0 %v45_v21 }
  0x1d   :  { %131 = vmatprep.subr.bf16.mxu0 %v139_v0 }
  0x20   :  { %132 = vmatpush3.bf16.msra.mxu0 %v46_v24 }
  0x23   :  { %134 = vmatmul.mubr.bf16.vlgmr.msra.gmra.mrb[0].mxu0 %v22_v26 }
  0xf6   :  { %v81_v28 = vpop.f32.mrb[0].mxu0 }
  0xf7   :  { %v100_v29 = vadd.f32 %v107_v27, %v81_v28  ;;  %v135_v30 = vpop.f32.mrb[1].mxu0 }
  0xf8   :  { %v84_v31 = vpop.f32.mrb[2].mxu0 }
  0xf9   :  { %v101_v32 = vmax.f32 %v100_v29, 0.0  ;;  %v136_v33 = vpop.f32.mrb[3].mxu0 }
  0xfb   :  { %102 = vst [vmem:[%s221_s3] sm:$0xff] %v101_v32 }

</bundles_post_ra>
